<compile_context>
chip_gen: v7x
topology: tpu7x:2x2x1
jax: 0.10.0
libtpu: 0.0.40
codegen_flags: <defaults>
</compile_context>

<pallas_src>
import jax
import jax.numpy as jnp
from jax import lax
from jax.experimental import pallas as pl
from jax.experimental.pallas import tpu as pltpu

NUM_CLASSES = 4
ZSIZE = 64

# Whole batch stays VMEM-resident (single pass, no grid) up to this many rows.
_SINGLE_TILE_MAX_ROWS = 16 * 1024
# Streaming batch-tile for larger batches (bf16 x tile = 1 MiB, 2 MiB double-buffered).
_DEFAULT_TILE_ROWS = 8 * 1024
# Explicit scoped-VMEM limit: ample for the tiles above, safe on every
# generation (v5e default scoped is only 16 MiB; v7x physical is 64 MiB).
_VMEM_LIMIT_BYTES = 32 * 1024 * 1024


# -----------------------------------------------------------------------------
# Parameter fusion (hoisted out of the per-call path; run once per model).
# -----------------------------------------------------------------------------
def fuse_params(w_enc, b_enc, w_cls, b_cls, *, compute_dtype=jnp.bfloat16):
    """PyTorch layouts: w_enc [Z, D_in], b_enc [Z], w_cls [C, Z], b_cls [C].
    Returns Wf^T [C, D_in] (compute_dtype) and bf [C, 1] (f32) such that
    logits^T = Wf^T @ x^T + bf."""
    w_enc = w_enc.astype(jnp.float32)
    b_enc = b_enc.astype(jnp.float32)
    w_cls = w_cls.astype(jnp.float32)
    b_cls = b_cls.astype(jnp.float32)
    wf_t = jnp.dot(w_cls, w_enc)                                    # [C, D_in]
    bf = (jnp.dot(w_cls, b_enc) + b_cls).reshape(NUM_CLASSES, 1)    # [C, 1]
    return wf_t.astype(compute_dtype), bf.astype(jnp.float32)


# -----------------------------------------------------------------------------
# Kernels
# -----------------------------------------------------------------------------
def _single_tile_kernel(x_ref, wft_ref, bf_ref, out_ref):
    """Whole batch resident: fused linear + softmax(dim=0) in one shot.
    x_ref [B, D_in], wft_ref [C, D_in], bf_ref [C, 1], out_ref [C, B]."""
    logits = lax.dot_general(
        wft_ref[...], x_ref[...],
        dimension_numbers=(((1,), (1,)), ((), ())),   # Wf^T @ x^T -> [C, B]
        preferred_element_type=jnp.float32,
    ) + bf_ref[...]

    m = jnp.max(logits, axis=1, keepdims=True)        # per-class max over batch
    e = jnp.exp(logits - m)
    s = jnp.sum(e, axis=1, keepdims=True)
    inv = pl.reciprocal(s, approx=True)
    inv = inv * (2.0 - s * inv)                       # Newton step -> f32 accuracy
    out_ref[...] = (e * inv).astype(out_ref.dtype)


def _make_stats_kernel(B, tile_b, nt):
    """Pass 1: per-tile matmul, per-tile (max, sum-of-exp) stats, and the
    unnormalized exp(logits - m_tile) written straight into the output slab."""
    has_partial = (B % tile_b) != 0   # static: mask only the last tile, only if needed

    def kernel(x_ref, wft_ref, bf_ref, e_ref, m_ref, s_ref):
        t = pl.program_id(0)
        logits = lax.dot_general(
            wft_ref[...], x_ref[...],
            dimension_numbers=(((1,), (1,)), ((), ())),   # [C, TB], batch lane-dense
            preferred_element_type=jnp.float32,
        ) + bf_ref[...]

        def emit(lg):
            m = jnp.max(lg, axis=1, keepdims=True)          # [C, 1]
            e = jnp.exp(lg - m)                             # [C, TB]  (0 on masked lanes)
            s = jnp.sum(e, axis=1, keepdims=True)           # [C, 1]
            e_ref[...] = e
            m_ref[...] = m[None]                            # [1, C, 1]
            s_ref[...] = s[None]                            # [1, C, 1]

        if has_partial:
            @pl.when(t == nt - 1)
            def _():
                lane = lax.broadcasted_iota(jnp.int32, logits.shape, 1)
                valid = lane < (B - t * tile_b)
                emit(jnp.where(valid, logits, -jnp.inf))

            @pl.when(t != nt - 1)
            def _():
                emit(logits)
        else:
            emit(logits)

    return kernel


def _normalize_kernel(e_ref, r_ref, o_ref):
    """Pass 2: out = e * r_tile, where r_tile = exp(m_tile - m_global) / s_global.
    e_ref [C, TB] (aliased with o_ref), r_ref [1, C, 1]."""
    o_ref[...] = (e_ref[...] * r_ref[0]).astype(o_ref.dtype)


# -----------------------------------------------------------------------------
# Wrapper
# -----------------------------------------------------------------------------
def classifier_forward(x, wf_t, bf, *, tile_b=None, class_major=False):
    """x: [B, D_in]; wf_t: [C, D_in]; bf: [C, 1] (from fuse_params).
    Returns softmax-over-batch probabilities, shape [B, C] (or [C, B] if
    class_major=True, which skips the wrapper transpose)."""
    B, D_in = x.shape
    C = wf_t.shape[0]

    # Stream x in the fused-weight dtype (bf16 by default).  In a real pipeline
    # the caller should hand x over already in this dtype so the cast fuses
    # with the producer instead of being a separate pass.
    if x.dtype != wf_t.dtype:
        x = x.astype(wf_t.dtype)

    if tile_b is None:
        tile_b = B if B <= _SINGLE_TILE_MAX_ROWS else _DEFAULT_TILE_ROWS

    if tile_b >= B:
        # Whole batch VMEM-resident: x read once, single pass, no grid overhead.
        out_t = pl.pallas_call(
            _single_tile_kernel,
            out_shape=jax.ShapeDtypeStruct((C, B), jnp.float32),
            in_specs=[pl.BlockSpec(memory_space=pltpu.MemorySpace.VMEM)] * 3,
            out_specs=pl.BlockSpec(memory_space=pltpu.MemorySpace.VMEM),
            compiler_params=pltpu.CompilerParams(vmem_limit_bytes=_VMEM_LIMIT_BYTES),
        )(x, wf_t, bf)
        return out_t if class_major else out_t.T

    if tile_b % 128 != 0:
        raise ValueError("batch tile must be a multiple of 128 for lane-dense output blocks")

    nt = pl.cdiv(B, tile_b)
    gridded_params = pltpu.CompilerParams(
        dimension_semantics=("parallel",),          # no cross-tile accumulation ->
        vmem_limit_bytes=_VMEM_LIMIT_BYTES,         # both v7x TensorCores share the stream
    )

    # ---- Pass 1: x streamed exactly once; emit exp slab + per-tile stats. ----
    e, m_t, s_t = pl.pallas_call(
        _make_stats_kernel(B, tile_b, nt),
        out_shape=(
            jax.ShapeDtypeStruct((C, B), jnp.float32),      # unnormalized exp(logits - m_t)
            jax.ShapeDtypeStruct((nt, C, 1), jnp.float32),  # per-tile max
            jax.ShapeDtypeStruct((nt, C, 1), jnp.float32),  # per-tile sum-of-exp
        ),
        grid_spec=pltpu.PrefetchScalarGridSpec(
            num_scalar_prefetch=0,
            grid=(nt,),
            in_specs=[
                pl.BlockSpec((tile_b, D_in), lambda t: (t, 0)),   # x tile
                pl.BlockSpec((C, D_in), lambda t: (0, 0)),        # fused weight
                pl.BlockSpec((C, 1), lambda t: (0, 0)),           # fused bias
            ],
            out_specs=(
                pl.BlockSpec((C, tile_b), lambda t: (0, t)),
                pl.BlockSpec((1, C, 1), lambda t: (t, 0, 0)),
                pl.BlockSpec((1, C, 1), lambda t: (t, 0, 0)),
            ),
        ),
        compiler_params=gridded_params,
    )(x, wf_t, bf)

    # ---- Tiny cross-tile stats merge ([nt, C] numbers, plain XLA). ----
    m_tiles = m_t[:, :, 0]                                            # [nt, C]
    s_tiles = s_t[:, :, 0]                                            # [nt, C]
    m_g = jnp.max(m_tiles, axis=0, keepdims=True)                     # [1, C]
    s_g = jnp.sum(s_tiles * jnp.exp(m_tiles - m_g), axis=0, keepdims=True)
    r = (jnp.exp(m_tiles - m_g) / s_g).reshape(nt, C, 1)              # per-tile rescale

    # ---- Pass 2: rescale the exp slab in place (aliased); never re-reads x. ----
    out_t = pl.pallas_call(
        _normalize_kernel,
        out_shape=jax.ShapeDtypeStruct((C, B), jnp.float32),
        grid_spec=pltpu.PrefetchScalarGridSpec(
            num_scalar_prefetch=0,
            grid=(nt,),
            in_specs=[
                pl.BlockSpec((C, tile_b), lambda t: (0, t)),      # exp slab (aliased to out)
                pl.BlockSpec((1, C, 1), lambda t: (t, 0, 0)),     # per-tile rescale factor
            ],
            out_specs=pl.BlockSpec((C, tile_b), lambda t: (0, t)),
        ),
        input_output_aliases={0: 0},
        compiler_params=gridded_params,
    )(e, r)

    return out_t if class_major else out_t.T


# -----------------------------------------------------------------------------
# Reference + demo
# -----------------------------------------------------------------------------
def _reference(x, w_enc, b_enc, w_cls, b_cls):
    z = x @ w_enc.T + b_enc
    logits = z @ w_cls.T + b_cls
    return jax.nn.softmax(logits, axis=0)


if __name__ == "__main__":
    key = jax.random.PRNGKey(0)
    k_x1, k_x2, k_we, k_be, k_wc, k_bc = jax.random.split(key, 6)

    D_in = 64

    # Deterministic synthetic parameters (torch-Linear shaped).
    w_enc = jax.random.normal(k_we, (ZSIZE, D_in), dtype=jnp.float32) * 0.1
    b_enc = jax.random.normal(k_be, (ZSIZE,), dtype=jnp.float32) * 0.1
    w_cls = jax.random.normal(k_wc, (NUM_CLASSES, ZSIZE), dtype=jnp.float32) * 0.1
    b_cls = jax.random.normal(k_bc, (NUM_CLASSES,), dtype=jnp.float32) * 0.1

    # Hoisted once-per-model weight fusion (bf16 stream by default).
    wf_t, bf = jax.block_until_ready(fuse_params(w_enc, b_enc, w_cls, b_cls))

    fwd_small = jax.jit(lambda xx: classifier_forward(xx, wf_t, bf))
    fwd_tiled = jax.jit(lambda xx: classifier_forward(xx, wf_t, bf, tile_b=128))

    # (1) Tiny batch -> single-tile, no-grid, whole-batch-in-VMEM path (bf16 stream).
    x_small = jax.random.normal(k_x1, (8, D_in), dtype=jnp.float32)
    out_s = jax.block_until_ready(fwd_small(x_small))
    ref_s = _reference(x_small, w_enc, b_enc, w_cls, b_cls)
    assert out_s.shape == (8, NUM_CLASSES)
    assert jnp.allclose(out_s, ref_s, atol=5e-3, rtol=5e-2)
    assert jnp.allclose(jnp.sum(out_s, axis=0), 1.0, atol=1e-3)

    # (2) Larger batch, tile_b forced small -> exercises the streaming two-pass
    #     path (per-tile stats, partial last tile masking, aliased normalize).
    B = 320
    x_big = jax.random.normal(k_x2, (B, D_in), dtype=jnp.float32)
    out_b = jax.block_until_ready(fwd_tiled(x_big))
    ref_b = _reference(x_big, w_enc, b_enc, w_cls, b_cls)
    assert out_b.shape == (B, NUM_CLASSES)
    assert jnp.allclose(out_b, ref_b, atol=5e-3, rtol=5e-2)
    assert jnp.allclose(jnp.sum(out_b, axis=0), 1.0, atol=1e-3)

    # (3) f32 sanity anchor (tight tolerance, single-tile path).
    wf32, bf32 = fuse_params(w_enc, b_enc, w_cls, b_cls, compute_dtype=jnp.float32)
    out_f = jax.block_until_ready(classifier_forward(x_small, wf32, bf32))
    assert jnp.allclose(out_f, ref_s, atol=1e-5, rtol=1e-4)

    print("KERNEL_OK")
</pallas_src>

<mosaic_0001>
module attributes {stable_mosaic.version = 11 : i64} {
  func.func @_single_tile_kernel(%arg0: memref<8x64xbf16, #tpu.memory_space<vmem>>, %arg1: memref<4x64xbf16, #tpu.memory_space<vmem>>, %arg2: memref<4x1xf32, #tpu.memory_space<vmem>>, %arg3: memref<4x8xf32, #tpu.memory_space<vmem>>) attributes {dimension_semantics = [], scalar_prefetch = 0 : i64, scratch_operands = 0 : i64, tpu.core_type = #tpu.core_type<tc>} {
    %c0 = arith.constant 0 : index
    %c0_0 = arith.constant 0 : index
    %0 = vector.load %arg1[%c0, %c0_0] : memref<4x64xbf16, #tpu.memory_space<vmem>>, vector<4x64xbf16>
    %c0_1 = arith.constant 0 : index
    %c0_2 = arith.constant 0 : index
    %1 = vector.load %arg0[%c0_1, %c0_2] : memref<8x64xbf16, #tpu.memory_space<vmem>>, vector<8x64xbf16>
    %cst = arith.constant dense<0.000000e+00> : vector<4x8xf32>
    %2 = tpu.matmul %0, %1, %cst {dimension_numbers = #tpu.dot_dimension_numbers<[1], [1], [0], [0], [0, 0, 1, 0], [], []>} : vector<4x64xbf16>, vector<8x64xbf16>, vector<4x8xf32> -> vector<4x8xf32>
    %c0_3 = arith.constant 0 : index
    %c0_4 = arith.constant 0 : index
    %3 = vector.load %arg2[%c0_3, %c0_4] : memref<4x1xf32, #tpu.memory_space<vmem>>, vector<4x1xf32>
    %4 = vector.broadcast %3 : vector<4x1xf32> to vector<4x8xf32>
    %5 = arith.addf %2, %4 : vector<4x8xf32>
    %cst_5 = arith.constant dense<0xFF800000> : vector<4xf32>
    %6 = vector.multi_reduction <maximumf>, %5, %cst_5 [1] : vector<4x8xf32> to vector<4xf32>
    %7 = vector.shape_cast %6 : vector<4xf32> to vector<4x1xf32>
    %8 = vector.broadcast %7 : vector<4x1xf32> to vector<4x8xf32>
    %9 = arith.subf %5, %8 : vector<4x8xf32>
    %10 = math.exp %9 : vector<4x8xf32>
    %cst_6 = arith.constant dense<0.000000e+00> : vector<4xf32>
    %11 = vector.multi_reduction <add>, %10, %cst_6 [1] : vector<4x8xf32> to vector<4xf32>
    %12 = vector.shape_cast %11 : vector<4xf32> to vector<4x1xf32>
    %13 = tpu.reciprocal %12 {approx = true} : vector<4x1xf32> -> vector<4x1xf32>
    %14 = arith.mulf %12, %13 : vector<4x1xf32>
    %cst_7 = arith.constant 2.000000e+00 : f32
    %15 = vector.broadcast %cst_7 : f32 to vector<4x1xf32>
    %16 = arith.subf %15, %14 : vector<4x1xf32>
    %17 = arith.mulf %13, %16 : vector<4x1xf32>
    %18 = vector.broadcast %17 : vector<4x1xf32> to vector<4x8xf32>
    %19 = arith.mulf %10, %18 : vector<4x8xf32>
    %c0_8 = arith.constant 0 : index
    %c0_9 = arith.constant 0 : index
    %20 = vector.load %arg3[%c0_8, %c0_9] : memref<4x8xf32, #tpu.memory_space<vmem>>, vector<4x8xf32>
    tpu.vector_store %arg3[%c0_8, %c0_9], %19 {strides = array<i32>} : memref<4x8xf32, #tpu.memory_space<vmem>>, vector<4x8xf32>,
    return
  }
}

</mosaic_0001>

<bundles_post_ra>
// kernel: _lambda_.1
= control target key start
LH: loop header
LB: loop body
LE: loop exit
PB: predicated region body
PF: predicated region fallthrough
CT: control target
= control target key end

     0   :  { %vm24_vm0 = vcmask 523264   ;;  %v143_v1 = vmov 0.0   ;;  %vm144_vm1 = vmmov 0   ;;  %v145_v4 = vmov 0   ;;  %s191_s0 = inlined_call_operand.vmem [shape: bf16[8,64], index: 0, kind: input, shape index: {}]   ;;  %s192_s1 = inlined_call_operand.vmem [shape: bf16[4,64], index: 1, kind: input, shape index: {}]   ;;  %s193_s2 = inlined_call_operand.vmem [shape: f32[4,1], index: 2, kind: input, shape index: {}]   ;;  %s194_s3 = inlined_call_operand.hbm [shape: f32[4,8], index: 3, kind: output, shape index: {}]  }
   0x1   :  { %v17_v0 = vld [vmem:[%s191_s0] sm:$0xf]  ;;  %104 = vmatprep.subr.bf16.mxu0 %v143_v1  ;;  %106 = vmatprep.mubr.msk.bf16.mxu0 %vm144_vm1, %v143_v1 }
   0x2   :  { %v29_v2 = vsel %vm24_vm0, %v17_v0, 0  ;;  %v18_v3 = vld [vmem:[%s193_s2] sm:$0xf]  ;;  %114 = vset.pattern.permute.xlu0 %v145_v4 }
   0x3   :  { %105 = vmatpush3.bf16.xpose.msra.mxu0 %v29_v2 }
   0x4   :  { %8 = vsyncpa [#allocation3], 0  ;;  %21 = vperm.xlu0 %114, %v18_v3   ;;  %v16_v5 = vld [vmem:[%s192_s1] sm:$0x3]  ;;  %vm71_vm2 = vcmask 60416   ;;  %s146_s0 = smov [#allocation2]  }
   0x5   :  { %s93_s1 = sshll.u32 %s146_s0, 4  ;;  %s94_s1 = int_to_ptr.vmem [resolvable:$true] %s93_s1 }
   0x6   :  { %s119_s2 = scalar_lea.vmem %s94_s1, 64  ;;  %p124_p1 = scmp.lt.s32.totalorder %s94_s1, %s94_s1 }
   0x7   :  { %p120_p0 = scmp.ne.s32.totalorder %s94_s1, %s119_s2  ;;  %p125_p2 = scmp.lt.s32.totalorder %s119_s2, %s119_s2 }
   0x9   :  { %p126_p3 = por %p125_p2, %p124_p1 }
   0xa   :  { %107 = vmatmul.mubr.msk.bf16.vlgmr.msra.gmra.mrb[0].mxu0 %vm24_vm0, %v16_v5 }
   0xb   :  { %p127_p4 = pnand %p126_p3, %p120_p0 }
  0x83   :  { %v22_v6 = vpop.permute.xlu0 %21 }
  0xdd   :  { %v65_v7 = vpop.f32.mrb[0].mxu0 }
  0xde   :  { %v66_v8 = vadd.f32 %v65_v7, %v22_v6  ;;  %v108_v9 = vpop.f32.mrb[1].mxu0 }
  0xdf   :  { %v68_v10 = vpop.f32.mrb[2].mxu0 }
  0xe0   :  { %v109_v11 = vpop.f32.mrb[3].mxu0  ;;  %v72_v12 = vsel %vm71_vm2, %v66_v8, -inf }
  0xe1   :  { %73 = vmax.xlane.f32.xlu0 %v72_v12 }
 0x16e   :  { %v74_v13 = vpop.xlane.xlu0 %73 }
 0x16f   :  { %v75_v14 = vsub.f32 %v66_v8, %v74_v13 }
 0x171   :  { %v76_v15 = vmul.f32 1.442695, %v75_v14 }
 0x173   :  { %115 = vpow2.f32 %v76_v15 }
 0x17d   :  { %v116_v16 = vpop.eup %115 }
 0x17e   :  { %v78_v17 = vsel %vm71_vm2, %v116_v16, 0.0 }
 0x17f   :  { %79 = vadd.xlane.f32.xlu1 %v78_v17 }
 0x20c   :  { %v80_v18 = vpop.xlane.xlu1 %79 }
 0x20d   :  { %117 = vrcp.f32 %v80_v18 }
 0x217   :  { %v118_v19 = vpop.eup %117 }
 0x218   :  { %v82_v20 = vmul.f32 %v118_v19, %v80_v18 }
 0x21a   :  { %v83_v21 = vsub.f32 2.0, %v82_v20 }
 0x21c   :  { %v84_v22 = vmul.f32 %v118_v19, %v83_v21 }
 0x21e   :  { %v85_v23 = vmul.f32 %v116_v16, %v84_v22 }
 0x220   :  { %86 = vst.msk [vmem:[#allocation2] sm:$0xf] %vm71_vm2, %v85_v23 }
 0x221   :  { %130 = shalt.err (!%p127_p4)
}
 0x222   :  { %s131_s20 = scalar_lea.hbm %s194_s3, 64 }
 0x223   :  { %p132_p5 = scmp.ne.s32.totalorder %s194_s3, %s131_s20  ;;  %p135_p6 = scmp.lt.u32.totalorder %s131_s20, %s194_s3 }
 0x225   :  { %p137_p7 = pnand %p135_p6, %p132_p5 }
 0x227   :  { %140 = shalt.err (!%p137_p7)
}
 0x228   :  { %96 = dma.vmem_to_hbm [thread:$0]  %s94_s1, 64, %s194_s3, [#allocation3]  }
 0x229   :  { %141 = dma.done.wait [#allocation3], 64  }
 0x22a   :  { %142 = vsyncadd [#allocation3], 4294967232 }
 0x22b   :  { %100 = vsyncpa [#allocation3], 1 }

</bundles_post_ra>
